<compile_context>
chip_gen: v5e
topology: v5e:2x2
jax: 0.10.0
libtpu: 0.0.40
codegen_flags: <defaults>
</compile_context>

<pallas_src>
import math

import jax
import jax.numpy as jnp
from jax.experimental import pallas as pl
from jax.experimental.pallas import tpu as pltpu

ALPHA = 3.0
GAMMA = 2.0          # compile-time 2 -> explicit squaring in the kernel
SMOOTH = 1e-6

_LANES = 128
_ACC_ROWS = 8                 # (8,128) = one f32 vreg-shaped partial-sum slab
_MAX_BLOCK_ROWS = 1024        # ~512 KiB f32 per input tile; fits VMEM on v5e/v6e/v7x

_LOG_SMOOTH = math.log(SMOOTH)
_LOG_1M_SMOOTH = math.log1p(-SMOOTH)


def _make_kernel(block_rows, chunks_per_core, n_valid, need_mask):
    n_groups = block_rows // _ACC_ROWS

    def kernel(logit_ref, tgt_ref, partial_ref):
        c = pl.program_id(0)   # "parallel" core axis
        j = pl.program_id(1)   # "arbitrary" reduction axis

        @pl.when(j == 0)
        def _init():
            partial_ref[...] = jnp.zeros_like(partial_ref)

        x = logit_ref[...].astype(jnp.float32)
        t = tgt_ref[...].astype(jnp.float32)

        # Shared numerically-stable sigmoid / log-sigmoid chain (exp, log1p, div).
        e = jnp.exp(-jnp.abs(x))
        sp = jnp.log1p(e)                           # softplus(-|x|)
        inv = 1.0 / (1.0 + e)
        prob = jnp.where(x >= 0.0, inv, e * inv)    # sigmoid(x)
        prob = jnp.clip(prob, SMOOTH, 1.0 - SMOOTH)
        # log(clip(sigmoid(x), s, 1-s)) == clip(log_sigmoid(x), log(s), log1p(-s))
        log_p = jnp.clip(jnp.minimum(x, 0.0) - sp, _LOG_SMOOTH, _LOG_1M_SMOOTH)
        log_sig_neg = -(jnp.maximum(x, 0.0) + sp)   # log_sigmoid(-x)

        pos_mask = (t == 1.0).astype(jnp.float32)
        neg_mask = (t == 0.0).astype(jnp.float32)
        one_m_p = 1.0 - prob

        # gamma == 2 -> explicit squares (VPU), no jnp.power (EUP exp/log).
        loss = (-pos_mask * (one_m_p * one_m_p) * log_p
                - ALPHA * neg_mask * (prob * prob) * log_sig_neg)

        if need_mask:
            chunk = c * chunks_per_core + j
            rid = (jax.lax.broadcasted_iota(jnp.int32, loss.shape, 0)
                   + chunk * block_rows)
            lid = jax.lax.broadcasted_iota(jnp.int32, loss.shape, 1)
            loss = jnp.where(rid * _LANES + lid < n_valid, loss, 0.0)

        # Pure-VPU partial reduction: fold row-groups of 8 into the (8,128) slab.
        partial_ref[...] += loss.reshape(n_groups, _ACC_ROWS, _LANES).sum(axis=0)

    return kernel


def binary_focal_loss(output, target):
    """Mean-reduced binary focal loss matching BinaryFocalLoss.forward."""
    assert output.shape == target.shape
    n = output.size

    out_flat = output.reshape(-1)   # native dtype; cast happens inside the kernel
    tgt_flat = target.reshape(-1)

    rows = -(-n // _LANES)
    rows = -(-rows // _ACC_ROWS) * _ACC_ROWS        # sublane-aligned row count
    padded = rows * _LANES
    if padded != n:
        # TODO(synk): tail pad (< 1024 elems) still makes XLA copy the flat arrays;
        # padded elements are zeroed by the in-kernel element mask regardless.
        out_flat = jnp.pad(out_flat, (0, padded - n))
        tgt_flat = jnp.pad(tgt_flat, (0, padded - n))

    out2d = out_flat.reshape(rows, _LANES)
    tgt2d = tgt_flat.reshape(rows, _LANES)

    block_rows = min(_MAX_BLOCK_ROWS, rows)
    total_chunks = -(-rows // block_rows)
    num_par = 2 if total_chunks >= 2 else 1          # split chunks across v7x's 2 TCs
    cpc = -(-total_chunks // num_par)                # chunks per core
    covered = num_par * cpc * block_rows * _LANES
    need_mask = covered != n

    kernel = _make_kernel(block_rows, cpc, n, need_mask)

    # Clamp the block index so an overrun chunk never issues a fully-OOB DMA;
    # its (duplicate) contribution is zeroed by the in-kernel element mask.
    in_spec = pl.BlockSpec(
        (block_rows, _LANES),
        lambda c, j: (jnp.minimum(c * cpc + j, total_chunks - 1), 0),
    )

    partials = pl.pallas_call(
        kernel,
        out_shape=jax.ShapeDtypeStruct((num_par * _ACC_ROWS, _LANES), jnp.float32),
        grid_spec=pltpu.PrefetchScalarGridSpec(
            num_scalar_prefetch=0,
            grid=(num_par, cpc),
            in_specs=[in_spec, in_spec],
            out_specs=pl.BlockSpec((_ACC_ROWS, _LANES), lambda c, j: (c, 0)),
        ),
        compiler_params=pltpu.CompilerParams(
            dimension_semantics=("parallel", "arbitrary"),
            vmem_limit_bytes=32 * 1024 * 1024,
        ),
    )(out2d, tgt2d)

    return jnp.sum(partials) / jnp.float32(n)


def _reference(output, target):
    """Straight JAX transcription of the PyTorch module (reduction='mean')."""
    prob = jnp.clip(jax.nn.sigmoid(output), SMOOTH, 1.0 - SMOOTH)
    pos_mask = (target == 1).astype(jnp.float32)
    neg_mask = (target == 0).astype(jnp.float32)
    pos_loss = -pos_mask * jnp.power(1.0 - prob, GAMMA) * jnp.log(prob)
    neg_loss = -ALPHA * neg_mask * jnp.power(prob, GAMMA) * jax.nn.log_sigmoid(-output)
    return jnp.mean(pos_loss + neg_loss)


if __name__ == "__main__":
    key = jax.random.PRNGKey(0)

    # Primary module-sized test: NCHW logits + binary target.
    k1, k2 = jax.random.split(key)
    output = jax.random.normal(k1, (2, 4, 16, 16), dtype=jnp.float32) * 2.0
    target = jax.random.bernoulli(k2, 0.4, (2, 4, 16, 16)).astype(jnp.float32)
    loss = jax.block_until_ready(binary_focal_loss(output, target))
    ref = jax.block_until_ready(_reference(output, target))
    assert jnp.allclose(loss, ref, rtol=2e-5, atol=1e-6), (loss, ref)

    # Exercise the multi-chunk + dual-core ("parallel") path with in-kernel masking.
    k3, k4 = jax.random.split(k2)
    output2 = jax.random.normal(k3, (2, 4, 128, 144), dtype=jnp.float32) * 2.0
    target2 = jax.random.bernoulli(k4, 0.3, (2, 4, 128, 144)).astype(jnp.float32)
    loss2 = jax.block_until_ready(binary_focal_loss(output2, target2))
    ref2 = jax.block_until_ready(_reference(output2, target2))
    assert jnp.allclose(loss2, ref2, rtol=2e-5, atol=1e-6), (loss2, ref2)

    # Ragged size (not a multiple of 128): tail pad + element-mask path.
    k5, k6 = jax.random.split(k4)
    output3 = jax.random.normal(k5, (3, 5, 37, 41), dtype=jnp.float32) * 2.0
    target3 = jax.random.bernoulli(k6, 0.5, (3, 5, 37, 41)).astype(jnp.float32)
    loss3 = jax.block_until_ready(binary_focal_loss(output3, target3))
    ref3 = jax.block_until_ready(_reference(output3, target3))
    assert jnp.allclose(loss3, ref3, rtol=2e-5, atol=1e-6), (loss3, ref3)

    print("KERNEL_OK")
</pallas_src>

<mosaic_0001>
module attributes {stable_mosaic.version = 11 : i64} {
  func.func @kernel(%arg0: i32, %arg1: i32, %arg2: memref<16x128xf32, #tpu.memory_space<vmem>>, %arg3: memref<16x128xf32, #tpu.memory_space<vmem>>, %arg4: memref<8x128xf32, #tpu.memory_space<vmem>>) attributes {dimension_semantics = [#tpu.dimension_semantics<parallel>, #tpu.dimension_semantics<arbitrary>], iteration_bounds = array<i64: 1, 1>, scalar_prefetch = 0 : i64, scratch_operands = 0 : i64, tpu.core_type = #tpu.core_type<tc>, window_params = [{transform_indices = @transform_0, window_bounds = array<i64: 16, 128>}, {transform_indices = @transform_1, window_bounds = array<i64: 16, 128>}, {transform_indices = @transform_2, window_bounds = array<i64: 8, 128>}]} {
    %c0_i32 = arith.constant 0 : i32
    %0 = arith.cmpi eq, %arg1, %c0_i32 : i32
    %1 = arith.extui %0 : i1 to i32
    %c0_i32_0 = arith.constant 0 : i32
    %2 = arith.cmpi ne, %1, %c0_i32_0 : i32
    scf.if %2 {
      %cst_24 = arith.constant 0.000000e+00 : f32
      %60 = vector.broadcast %cst_24 : f32 to vector<8x128xf32>
      %c0_25 = arith.constant 0 : index
      %c0_26 = arith.constant 0 : index
      %61 = vector.load %arg4[%c0_25, %c0_26] : memref<8x128xf32, #tpu.memory_space<vmem>>, vector<8x128xf32>
      tpu.vector_store %arg4[%c0_25, %c0_26], %60 {strides = array<i32>} : memref<8x128xf32, #tpu.memory_space<vmem>>, vector<8x128xf32>,
    } else {
    }
    %c0 = arith.constant 0 : index
    %c0_1 = arith.constant 0 : index
    %3 = vector.load %arg2[%c0, %c0_1] : memref<16x128xf32, #tpu.memory_space<vmem>>, vector<16x128xf32>
    %c0_2 = arith.constant 0 : index
    %c0_3 = arith.constant 0 : index
    %4 = vector.load %arg3[%c0_2, %c0_3] : memref<16x128xf32, #tpu.memory_space<vmem>>, vector<16x128xf32>
    %5 = math.absf %3 : vector<16x128xf32>
    %cst = arith.constant 0.000000e+00 : f32
    %6 = vector.broadcast %cst : f32 to vector<16x128xf32>
    %7 = arith.subf %6, %5 : vector<16x128xf32>
    %8 = math.exp %7 : vector<16x128xf32>
    %9 = math.log1p %8 : vector<16x128xf32>
    %cst_4 = arith.constant 1.000000e+00 : f32
    %10 = vector.broadcast %cst_4 : f32 to vector<16x128xf32>
    %11 = arith.addf %10, %8 : vector<16x128xf32>
    %cst_5 = arith.constant 1.000000e+00 : f32
    %12 = vector.broadcast %cst_5 : f32 to vector<16x128xf32>
    %13 = arith.divf %12, %11 : vector<16x128xf32>
    %cst_6 = arith.constant 0.000000e+00 : f32
    %14 = vector.broadcast %cst_6 : f32 to vector<16x128xf32>
    %15 = arith.cmpf oge, %3, %14 : vector<16x128xf32>
    %16 = arith.mulf %8, %13 : vector<16x128xf32>
    %17 = arith.select %15, %13, %16 : vector<16x128xi1>, vector<16x128xf32>
    %cst_7 = arith.constant 9.99999997E-7 : f32
    %cst_8 = arith.constant 0.999998986 : f32
    %18 = vector.broadcast %cst_7 : f32 to vector<16x128xf32>
    %19 = arith.maximumf %18, %17 : vector<16x128xf32>
    %20 = vector.broadcast %cst_8 : f32 to vector<16x128xf32>
    %21 = arith.minimumf %20, %19 : vector<16x128xf32>
    %cst_9 = arith.constant 0.000000e+00 : f32
    %22 = vector.broadcast %cst_9 : f32 to vector<16x128xf32>
    %23 = arith.minimumf %3, %22 : vector<16x128xf32>
    %24 = arith.subf %23, %9 : vector<16x128xf32>
    %cst_10 = arith.constant -13.8155107 : f32
    %cst_11 = arith.constant -1.00000045E-6 : f32
    %25 = vector.broadcast %cst_10 : f32 to vector<16x128xf32>
    %26 = arith.maximumf %25, %24 : vector<16x128xf32>
    %27 = vector.broadcast %cst_11 : f32 to vector<16x128xf32>
    %28 = arith.minimumf %27, %26 : vector<16x128xf32>
    %cst_12 = arith.constant 0.000000e+00 : f32
    %29 = vector.broadcast %cst_12 : f32 to vector<16x128xf32>
    %30 = arith.maximumf %3, %29 : vector<16x128xf32>
    %31 = arith.addf %30, %9 : vector<16x128xf32>
    %cst_13 = arith.constant 0.000000e+00 : f32
    %32 = vector.broadcast %cst_13 : f32 to vector<16x128xf32>
    %33 = arith.subf %32, %31 : vector<16x128xf32>
    %cst_14 = arith.constant 1.000000e+00 : f32
    %34 = vector.broadcast %cst_14 : f32 to vector<16x128xf32>
    %35 = arith.cmpf oeq, %4, %34 : vector<16x128xf32>
    %36 = arith.extui %35 : vector<16x128xi1> to vector<16x128xi32>
    %37 = arith.sitofp %36 : vector<16x128xi32> to vector<16x128xf32>
    %cst_15 = arith.constant 0.000000e+00 : f32
    %38 = vector.broadcast %cst_15 : f32 to vector<16x128xf32>
    %39 = arith.cmpf oeq, %4, %38 : vector<16x128xf32>
    %40 = arith.extui %39 : vector<16x128xi1> to vector<16x128xi32>
    %41 = arith.sitofp %40 : vector<16x128xi32> to vector<16x128xf32>
    %cst_16 = arith.constant 1.000000e+00 : f32
    %42 = vector.broadcast %cst_16 : f32 to vector<16x128xf32>
    %43 = arith.subf %42, %21 : vector<16x128xf32>
    %cst_17 = arith.constant 0.000000e+00 : f32
    %44 = vector.broadcast %cst_17 : f32 to vector<16x128xf32>
    %45 = arith.subf %44, %37 : vector<16x128xf32>
    %46 = arith.mulf %43, %43 : vector<16x128xf32>
    %47 = arith.mulf %45, %46 : vector<16x128xf32>
    %48 = arith.mulf %47, %28 : vector<16x128xf32>
    %cst_18 = arith.constant 3.000000e+00 : f32
    %49 = vector.broadcast %cst_18 : f32 to vector<16x128xf32>
    %50 = arith.mulf %49, %41 : vector<16x128xf32>
    %51 = arith.mulf %21, %21 : vector<16x128xf32>
    %52 = arith.mulf %50, %51 : vector<16x128xf32>
    %53 = arith.mulf %52, %33 : vector<16x128xf32>
    %54 = arith.subf %48, %53 : vector<16x128xf32>
    %c0_19 = arith.constant 0 : index
    %c0_20 = arith.constant 0 : index
    %55 = vector.load %arg4[%c0_19, %c0_20] : memref<8x128xf32, #tpu.memory_space<vmem>>, vector<8x128xf32>
    %56 = vector.shape_cast %54 : vector<16x128xf32> to vector<2x8x128xf32>
    %cst_21 = arith.constant dense<0.000000e+00> : vector<8x128xf32>
    %57 = vector.multi_reduction <add>, %56, %cst_21 [0] : vector<2x8x128xf32> to vector<8x128xf32>
    %58 = arith.addf %55, %57 : vector<8x128xf32>
    %c0_22 = arith.constant 0 : index
    %c0_23 = arith.constant 0 : index
    %59 = vector.load %arg4[%c0_22, %c0_23] : memref<8x128xf32, #tpu.memory_space<vmem>>, vector<8x128xf32>
    tpu.vector_store %arg4[%c0_22, %c0_23], %58 {strides = array<i32>} : memref<8x128xf32, #tpu.memory_space<vmem>>, vector<8x128xf32>,
    return
  }
  func.func @transform_0(%arg0: i32, %arg1: i32) -> (i32, i32) {
    %c1_i32 = arith.constant 1 : i32
    %0 = arith.muli %arg0, %c1_i32 : i32
    %1 = arith.addi %0, %arg1 : i32
    %c0_i32 = arith.constant 0 : i32
    %2 = arith.minsi %1, %c0_i32 : i32
    %c0_i32_0 = arith.constant 0 : i32
    %c0_i32_1 = arith.constant 0 : i32
    return %2, %c0_i32_0 : i32, i32
  }
  func.func @transform_1(%arg0: i32, %arg1: i32) -> (i32, i32) {
    %c1_i32 = arith.constant 1 : i32
    %0 = arith.muli %arg0, %c1_i32 : i32
    %1 = arith.addi %0, %arg1 : i32
    %c0_i32 = arith.constant 0 : i32
    %2 = arith.minsi %1, %c0_i32 : i32
    %c0_i32_0 = arith.constant 0 : i32
    %c0_i32_1 = arith.constant 0 : i32
    return %2, %c0_i32_0 : i32, i32
  }
  func.func @transform_2(%arg0: i32, %arg1: i32) -> (i32, i32) {
    %c0_i32 = arith.constant 0 : i32
    %c0_i32_0 = arith.constant 0 : i32
    return %arg0, %c0_i32 : i32, i32
  }
}

</mosaic_0001>

<bundles_post_ra>
// kernel: tpu_custom_call.1
= control target key start
LH: loop header
LB: loop body
LE: loop exit
PB: predicated region body
PF: predicated region fallthrough
CT: control target
= control target key end

     0   :  { %7 = vsyncpa [#allocation3], 0  ;;  %s386_s0 = inlined_call_operand.hbm [shape: f32[16,128], index: 0, kind: input, shape index: {}]   ;;  %s387_s1 = inlined_call_operand.hbm [shape: f32[16,128], index: 1, kind: input, shape index: {}]   ;;  %s388_s2 = inlined_call_operand.hbm [shape: f32[8,128], index: 2, kind: output, shape index: {}]  }
   0x1   :  { %8 = vsyncpa [#allocation6], 0 }
   0x2   :  { %9 = vsyncpa [#allocation4], 0  ;;  %s20_s11 = sshll.u32 %s386_s0, 4  ;;  %s313_s12 = smov [#allocation2]   ;;  %s21_s11 = int_to_ptr.hbm [resolvable:$true] %s20_s11 }
   0x3   :  { %s22_s13 = sshll.u32 %s313_s12, 4  ;;  %s39_s16 = sshll.u32 %s387_s1, 4  ;;  %s23_s13 = int_to_ptr.vmem [resolvable:$true] %s22_s13  ;;  %s40_s16 = int_to_ptr.hbm [resolvable:$true] %s39_s16 }
   0x4   :  { %s314_s17 = smov 128   ;;  %s315_s18 = smov 8  }
   0x5   :  { %28 = dma.hbm_to_vmem [thread:$0]  %s21_s11, 256, %s23_s13, [#allocation3], %s314_s17, %s314_s17, %s315_s18  }
   0x6   :  { %s316_s19 = smov [#allocation5]  }
   0x7   :  { %s41_s20 = sshll.u32 %s316_s19, 4  ;;  %s42_s20 = int_to_ptr.vmem [resolvable:$true] %s41_s20 }
   0x8   :  { %47 = dma.hbm_to_vmem [thread:$0]  %s40_s16, 256, %s42_s20, [#allocation6], %s314_s17, %s314_s17, %s315_s18  }
   0x9   :  { %307 = dma.done.wait [#allocation3], 256  }
   0xa   :  { %308 = vsyncadd [#allocation3], 4294967040 }
   0xb   :  { %309 = dma.done.wait [#allocation6], 256  }
   0xc   :  { %310 = vsyncadd [#allocation6], 4294967040  ;;  %v340_v0 = vld [vmem:[#allocation2] sm:$0xff]  ;;  %v342_v1 = vld [vmem:[#allocation2 + $0x8] sm:$0xff]  ;;  %v317_v57 = vmov 0.0   ;;  %s318_s0 = smov [#allocation7]  }
   0xd   :  { %v73_v2 = vand.u32 2147483647, %v340_v0  ;;  %v74_v3 = vand.u32 2147483647, %v342_v1  ;;  %v350_v14 = vld [vmem:[#allocation5] sm:$0xff]  ;;  %v72_v31 = vld [vmem:[#allocation5 + $0x8] sm:$0xff] }
   0xe   :  { %vm161_vm0 = vcmp.eq.f32.partialorder %v350_v14, 0.0  ;;  %vm162_vm10 = vcmp.eq.f32.partialorder %v72_v31, 0.0  ;;  %v141_v44 = vmin.f32 %v340_v0, 0.0  ;;  %vm131_vm12 = vcmp.ge.f32.partialorder %v340_v0, 0.0  ;;  %s196_s1 = sshll.u32 %s318_s0, 4  ;;  %s198_s23 = sshll.u32 %s388_s2, 4  ;;  %s197_s1 = int_to_ptr.vmem [resolvable:$true] %s196_s1  ;;  %s199_s23 = int_to_ptr.hbm [resolvable:$true] %s198_s23 }
   0xf   :  { %v75_v4 = vsub.f32 0.0, %v73_v2  ;;  %v76_v5 = vsub.f32 0.0, %v74_v3  ;;  %v142_v47 = vmin.f32 %v342_v1, 0.0  ;;  %v149_v51 = vmax.f32 %v340_v0, 0.0 }
  0x10   :  { %vm132_vm13 = vcmp.ge.f32.partialorder %v342_v1, 0.0  ;;  %v150_v54 = vmax.f32 %v342_v1, 0.0  ;;  %vm155_vm14 = vcmp.eq.f32.partialorder %v350_v14, 1.0  ;;  %vm156_vm15 = vcmp.eq.f32.partialorder %v72_v31, 1.0 }
  0x11   :  { %v77_v6 = vmul.f32 1.442695, %v75_v4  ;;  %v79_v7 = vmul.f32 1.442695, %v76_v5  ;;  %v215_v58 = vsel %vm161_vm0, 1.0, %v317_v57  ;;  %v216_v61 = vsel %vm162_vm10, 1.0, %v317_v57 }
  0x12   :  { %v213_v1 = vsel %vm155_vm14, 1.0, %v317_v57  ;;  %v214_v5 = vsel %vm156_vm15, 1.0, %v317_v57 }
  0x13   :  { %223 = vpow2.f32 %v77_v6  ;;  %v177_v6 = vmul.f32 3.0, %v215_v58 }
  0x14   :  { %225 = vpow2.f32 %v79_v7 }
  0x19   :  { %v224_v8 = vpop.eup %223 }
  0x1a   :  { %v346_v9 = vpop.eup %225  ;;  %v81_v10 = vadd.f32 1.0, %v224_v8  ;;  %v84_v12 = vmul.f32 -0.5, %v224_v8  ;;  %v87_v18 = vand.u32 2147483647, %v224_v8 }
  0x1b   :  { %v90_v11 = vadd.f32 1.0, %v346_v9  ;;  %v93_v13 = vmul.f32 -0.5, %v346_v9  ;;  %v96_v19 = vand.u32 2147483647, %v346_v9 }
  0x1c   :  { %227 = vrcp.f32 %v81_v10  ;;  %v85_v17 = vadd.f32 1.0, %v84_v12  ;;  %vm106_vm1 = vweird.f32 %v81_v10  ;;  %v112_v23 = vand.u32 2147483648, %v81_v10 }
  0x1d   :  { %229 = vrcp.f32 %v90_v11  ;;  %v94_v22 = vadd.f32 1.0, %v93_v13  ;;  %v110_v27 = vand.u32 2147483647, %v81_v10  ;;  %v127_v28 = vand.u32 2147483648, %v90_v11 }
  0x1e   :  { %231 = vlog2.f32 %v81_v10  ;;  %vm121_vm3 = vweird.f32 %v90_v11  ;;  %v125_v30 = vand.u32 2147483647, %v90_v11  ;;  %v86_v33 = vmul.f32 %v224_v8, %v85_v17 }
  0x1f   :  { %233 = vlog2.f32 %v90_v11  ;;  %vm354_vm5 = vcmp.lt.f32.partialorder %v87_v18, 0.0004427343  ;;  %v95_v37 = vmul.f32 %v346_v9, %v94_v22  ;;  %v113_v39 = vor.u32 1.1754944e-38, %v112_v23 }
  0x20   :  { %vm97_vm7 = vcmp.lt.f32.partialorder %v96_v19, 0.0004427343  ;;  %vm111_vm8 = vcmp.eq.f32.partialorder %v110_v27, 8.507059e+37  ;;  %v128_v42 = vor.u32 1.1754944e-38, %v127_v28  ;;  %vm126_vm11 = vcmp.eq.f32.partialorder %v125_v30, 8.507059e+37 }
  0x21   :  { %v169_v12 = vsub.f32 0.0, %v213_v1 }
  0x22   :  { %v228_v15 = vpop.eup %227 }
  0x23   :  { %v230_v16 = vpop.eup %229  ;;  %v102_v20 = vmul.f32 %v228_v15, %v81_v10  ;;  %vm107_vm2 = vweird.f32 %v228_v15 }
  0x24   :  { %v232_v21 = vpop.eup %231  ;;  %v117_v24 = vmul.f32 %v230_v16, %v90_v11  ;;  %vm122_vm4 = vweird.f32 %v230_v16  ;;  %vm360_vm6 = vmor %vm106_vm1, %vm107_vm2 }
  0x25   :  { %v234_v25 = vpop.eup %233  ;;  %v103_v26 = vsub.f32 1.0, %v102_v20  ;;  %v83_v32 = vmul.f32 0.6931472, %v232_v21  ;;  %vm123_vm9 = vmor %vm121_vm3, %vm122_vm4 }
  0x26   :  { %v118_v29 = vsub.f32 1.0, %v117_v24  ;;  %v92_v36 = vmul.f32 0.6931472, %v234_v25 }
  0x27   :  { %v104_v35 = vmul.f32 %v228_v15, %v103_v26  ;;  %v89_v45 = vsel %vm354_vm5, %v86_v33, %v83_v32 }
  0x28   :  { %v119_v40 = vmul.f32 %v230_v16, %v118_v29  ;;  %v98_v48 = vsel %vm97_vm7, %v95_v37, %v92_v36  ;;  %v143_v56 = vsub.f32 %v141_v44, %v89_v45  ;;  %v151_v2 = vadd.f32 %v149_v51, %v89_v45 }
  0x29   :  { %v105_v41 = vadd.f32 %v228_v15, %v104_v35  ;;  %v144_v60 = vsub.f32 %v142_v47, %v98_v48  ;;  %v152_v4 = vadd.f32 %v150_v54, %v98_v48 }
  0x2a   :  { %v120_v43 = vadd.f32 %v230_v16, %v119_v40  ;;  %v153_v13 = vsub.f32 0.0, %v151_v2 }
  0x2b   :  { %v109_v46 = vsel %vm360_vm6, %v228_v15, %v105_v41  ;;  %v146_v11 = vmax.f32 %v144_v60, -13.815511  ;;  %v170_v15 = vsub.f32 0.0, %v214_v5 }
  0x2c   :  { %v114_v49 = vsel %vm111_vm8, %v113_v39, %v109_v46  ;;  %v124_v50 = vsel %vm123_vm9, %v230_v16, %v120_v43  ;;  %v154_v16 = vsub.f32 0.0, %v152_v4 }
  0x2d   :  { %v129_v52 = vsel %vm126_vm11, %v128_v42, %v124_v50  ;;  %v133_v53 = vmul.f32 %v224_v8, %v114_v49  ;;  %v145_v8 = vmax.f32 %v143_v56, -13.815511  ;;  %v148_v22 = vmin.f32 %v146_v11, -1.0000005e-06 }
  0x2e   :  { %v134_v55 = vmul.f32 %v346_v9, %v129_v52  ;;  %v178_v9 = vmul.f32 3.0, %v216_v61 }
  0x2f   :  { %v135_v59 = vsel %vm131_vm12, %v114_v49, %v133_v53  ;;  %v147_v19 = vmin.f32 %v145_v8, -1.0000005e-06 }
  0x30   :  { %v136_v62 = vsel %vm132_vm13, %v129_v52, %v134_v55  ;;  %v137_v63 = vmax.f32 %v135_v59, 1e-06 }
  0x31   :  { %v138_v3 = vmax.f32 %v136_v62, 1e-06 }
  0x32   :  { %v139_v7 = vmin.f32 %v137_v63, 0.999999 }
  0x33   :  { %v140_v10 = vmin.f32 %v138_v3, 0.999999 }
  0x34   :  { %v167_v0 = vsub.f32 1.0, %v139_v7  ;;  %v179_v14 = vmul.f32 %v139_v7, %v139_v7 }
  0x35   :  { %v168_v17 = vsub.f32 1.0, %v140_v10  ;;  %v180_v18 = vmul.f32 %v140_v10, %v140_v10 }
  0x36   :  { %v171_v20 = vmul.f32 %v167_v0, %v167_v0  ;;  %v181_v21 = vmul.f32 %v179_v14, %v177_v6 }
  0x37   :  { %v172_v23 = vmul.f32 %v168_v17, %v168_v17  ;;  %v182_v24 = vmul.f32 %v180_v18, %v178_v9 }
  0x38   :  { %v173_v25 = vmul.f32 %v171_v20, %v169_v12  ;;  %v183_v26 = vmul.f32 %v181_v21, %v153_v13 }
  0x39   :  { %v174_v27 = vmul.f32 %v172_v23, %v170_v15  ;;  %v184_v28 = vmul.f32 %v182_v24, %v154_v16 }
  0x3a   :  { %v175_v29 = vmul.f32 %v173_v25, %v147_v19 }
  0x3b   :  { %v176_v30 = vmul.f32 %v174_v27, %v148_v22 }
  0x3c   :  { %v185_v31 = vsub.f32 %v175_v29, %v183_v26 }
  0x3d   :  { %v186_v32 = vsub.f32 %v176_v30, %v184_v28 }
  0x3f   :  { %v188_v33 = vadd.f32 %v186_v32, %v185_v31 }
  0x41   :  { %190 = vst [vmem:[#allocation7] sm:$0xff] %v188_v33 }
  0x42   :  { %201 = dma.vmem_to_hbm [thread:$0]  %s197_s1, 128, %s199_s23, [#allocation4]  }
  0x43   :  { %311 = dma.done.wait [#allocation4], 128  }
  0x44   :  { %312 = vsyncadd [#allocation4], 4294967168 }
  0x45   :  { %206 = vsyncpa [#allocation3], 1 }
  0x46   :  { %207 = vsyncpa [#allocation6], 1 }
  0x47   :  { %208 = vsyncpa [#allocation4], 1 }

</bundles_post_ra>
